<compile_context>
chip_gen: v5e
topology: v5e:2x2
jax: 0.10.0
libtpu: 0.0.40
codegen_flags: <defaults>
</compile_context>

<pallas_src>
import functools

import jax
import jax.numpy as jnp
from jax import lax
from jax.experimental import pallas as pl
from jax.experimental.pallas import tpu as pltpu


# ----------------------------- kernels --------------------------------------


def _pad_sublanes(x, rows):
    """Zero-pad the leading (sublane) axis of a 2-D array up to `rows` rows."""
    c = x.shape[0]
    if rows == c:
        return x
    pad = jnp.zeros((rows - c, x.shape[1]), dtype=x.dtype)
    return jnp.concatenate([x, pad], axis=0)


def _patch_embed_kernel(x_ref, o_ref, *, c_true):
    # x_ref: (Bt, C, TN) channel-major tile;  o_ref: (Bt, TN, C_out) token-major.
    bt = x_ref.shape[0]
    c_out = o_ref.shape[-1]
    del c_true
    for i in range(bt):                        # Bt is a small static constant
        x = x_ref[i]                           # (C, TN)
        x = _pad_sublanes(x, c_out)            # (C_out, TN) -> lane-dense stores
        o_ref[i] = x.T.astype(o_ref.dtype)     # one XLU transpose per batch elem


def _patch_embed_norm_kernel(x_ref, g_ref, b_ref, o_ref, *, eps, c_true):
    # Fused flatten/transpose + LayerNorm(embed_dim); statistics in f32.
    bt = x_ref.shape[0]
    c_out = o_ref.shape[-1]
    inv_c = 1.0 / float(c_true)
    for i in range(bt):
        x = x_ref[i].astype(jnp.float32)                        # (C, TN)
        # Per-token stats in the pre-transpose layout: cross-sublane reductions
        # (cheap on the VPU/XLU mix), keeping the XLU free for the transpose.
        mean = jnp.sum(x, axis=0, keepdims=True) * inv_c        # (1, TN)
        xc = x - mean
        var = jnp.sum(xc * xc, axis=0, keepdims=True) * inv_c   # (1, TN)
        xn = xc * lax.rsqrt(var + eps)                          # (C, TN)
        xn = _pad_sublanes(xn, c_out)                           # (C_out, TN)
        y = xn.T * g_ref[...] + b_ref[...]                      # (TN, C_out)
        o_ref[i] = y.astype(o_ref.dtype)


# ----------------------------- tiling helpers --------------------------------


def _vmem_capacity_bytes():
    try:
        return int(pltpu.get_tpu_info().vmem_capacity_bytes)
    except Exception:
        return 64 * 1024 * 1024          # be conservative (v7x) if we cannot query


def _tile_footprint_bytes(bt, tn, c_in, c_out, isz_in, isz_out, has_norm):
    # Double-buffered input + output pipeline tiles, plus f32 temporaries for
    # the LayerNorm path (x / xc / transposed-y live ranges can spill to VMEM).
    pipeline = 2 * bt * tn * (c_in * isz_in + c_out * isz_out)
    temps = 3 * bt * tn * c_in * 4 if has_norm else 0
    return pipeline + temps


def _choose_tiles(batch, hw, c_in, c_out, isz_in, isz_out, has_norm, budget):
    candidates = (4096, 2048, 1024, 512, 256, 128)
    tn = None
    # Largest multiple of 128 that divides HW and fits the VMEM budget.
    for cand in candidates:
        if (cand <= hw and hw % cand == 0 and
                _tile_footprint_bytes(1, cand, c_in, c_out, isz_in, isz_out,
                                      has_norm) <= budget):
            tn = cand
            break
    if tn is None:
        if hw <= 128:
            tn = hw              # full token axis; block dims equal full array dims
        else:
            # No 128-multiple divides HW: take the largest one that fits and let
            # Pallas clip the (partial) edge block; un-written rows are dropped.
            tn = 128
            for cand in candidates[:-1]:
                if (cand <= hw and
                        _tile_footprint_bytes(1, cand, c_in, c_out, isz_in,
                                              isz_out, has_norm) <= budget):
                    tn = cand
                    break
    # Small images: fold several batch elements per step to amortize the
    # per-grid-step overhead (~0.35 us) the same way a bigger TN would.
    bt = 1
    if tn == hw:
        for cand in (8, 4, 2):
            if (batch % cand == 0 and
                    _tile_footprint_bytes(cand, tn, c_in, c_out, isz_in,
                                          isz_out, has_norm) <= budget):
                bt = cand
                break
    return bt, tn


# ----------------------------- wrapper ---------------------------------------


def patch_embed_pallas(x, gamma=None, beta=None, *, eps=1e-5):
    """x: (B, C, H, W) -> (B, H*W, C), optional LayerNorm over C (embed_dim)."""
    B, C, H, W = x.shape
    HW = H * W
    x3 = x.reshape(B, C, HW)                 # free reshape, no data movement

    has_norm = gamma is not None
    # Lane-dense output stores: pad embed_dim to a multiple of 128 in-kernel
    # and slice the pad off after the call.
    c_out = (-(-C // 128)) * 128 if C % 128 else C

    isz_in = jnp.dtype(x.dtype).itemsize
    isz_out = isz_in
    capacity = _vmem_capacity_bytes()
    budget = int(capacity * 0.6)             # headroom for compiler scratch/regalloc
    bt, tn = _choose_tiles(B, HW, C, c_out, isz_in, isz_out, has_norm, budget)
    grid = (B // bt, pl.cdiv(HW, tn))

    footprint = _tile_footprint_bytes(bt, tn, C, c_out, isz_in, isz_out, has_norm)
    vmem_limit = int(min(capacity * 0.9,
                         max(16 * 1024 * 1024,
                             footprint * 1.3 + 4 * 1024 * 1024)))

    in_specs = [pl.BlockSpec((bt, C, tn), lambda b, t: (b, 0, t))]
    args = [x3]
    if has_norm:
        g_pad = jnp.zeros((1, c_out), jnp.float32).at[0, :C].set(
            gamma.reshape(C).astype(jnp.float32))
        b_pad = jnp.zeros((1, c_out), jnp.float32).at[0, :C].set(
            beta.reshape(C).astype(jnp.float32))
        in_specs += [pl.BlockSpec((1, c_out), lambda b, t: (0, 0)),   # gamma resident
                     pl.BlockSpec((1, c_out), lambda b, t: (0, 0))]   # beta resident
        args += [g_pad, b_pad]
        kernel = functools.partial(_patch_embed_norm_kernel, eps=float(eps), c_true=C)
    else:
        kernel = functools.partial(_patch_embed_kernel, c_true=C)

    cost = pl.CostEstimate(
        flops=(8 * B * HW * C) if has_norm else 1,
        transcendentals=(B * HW) if has_norm else 0,
        bytes_accessed=B * HW * (C * isz_in + c_out * isz_out)
                       + (8 * c_out if has_norm else 0),
    )

    out = pl.pallas_call(
        kernel,
        out_shape=jax.ShapeDtypeStruct((B, HW, c_out), x.dtype),
        grid_spec=pltpu.PrefetchScalarGridSpec(
            num_scalar_prefetch=0,
            grid=grid,
            in_specs=in_specs,
            out_specs=pl.BlockSpec((bt, tn, c_out), lambda b, t: (b, t, 0)),
        ),
        compiler_params=pltpu.CompilerParams(
            # TODO(synk): on v7x verify both TensorCores split the leading axis;
            # if xprof shows one TC idle, switch to pltpu.CORE_PARALLEL.
            dimension_semantics=("parallel", "parallel"),
            vmem_limit_bytes=vmem_limit,
        ),
        cost_estimate=cost,
    )(*args)

    if c_out != C:
        out = out[:, :, :C]                  # drop the lane padding
    return out


# ----------------------------- reference & test -------------------------------


def patch_embed_ref(x, gamma=None, beta=None, eps=1e-5):
    B, C, H, W = x.shape
    y = jnp.transpose(x.reshape(B, C, H * W), (0, 2, 1))
    if gamma is not None:
        y32 = y.astype(jnp.float32)
        mean = jnp.mean(y32, axis=-1, keepdims=True)
        var = jnp.mean((y32 - mean) ** 2, axis=-1, keepdims=True)
        y = ((y32 - mean) * lax.rsqrt(var + eps) * gamma + beta).astype(x.dtype)
    return y


if __name__ == "__main__":
    key = jax.random.PRNGKey(0)
    kx, kg, kb, kx2, kg2, kb2 = jax.random.split(key, 6)

    # Small shapes consistent with the module: x is (B, embed_dim, H, W).
    B, C, H, W = 2, 128, 16, 16
    x = jax.random.normal(kx, (B, C, H, W), dtype=jnp.float32)

    # Path 1: norm_layer=None (module default) -> pure flatten + transpose.
    y0 = jax.block_until_ready(patch_embed_pallas(x))
    assert y0.shape == (B, H * W, C)
    assert jnp.allclose(y0, patch_embed_ref(x), atol=1e-6, rtol=1e-6)

    # Path 2: norm_layer=nn.LayerNorm(embed_dim), fused into the same kernel.
    gamma = 1.0 + 0.1 * jax.random.normal(kg, (C,), dtype=jnp.float32)
    beta = 0.1 * jax.random.normal(kb, (C,), dtype=jnp.float32)
    y1 = jax.block_until_ready(patch_embed_pallas(x, gamma, beta))
    assert y1.shape == (B, H * W, C)
    assert jnp.allclose(y1, patch_embed_ref(x, gamma, beta), atol=1e-5, rtol=1e-5)

    # Path 3: embed_dim not a multiple of 128 (module default 96) -> padded lanes.
    C2 = 96
    x2 = jax.random.normal(kx2, (B, C2, H, W), dtype=jnp.float32)
    gamma2 = 1.0 + 0.1 * jax.random.normal(kg2, (C2,), dtype=jnp.float32)
    beta2 = 0.1 * jax.random.normal(kb2, (C2,), dtype=jnp.float32)
    y2 = jax.block_until_ready(patch_embed_pallas(x2, gamma2, beta2))
    assert y2.shape == (B, H * W, C2)
    assert jnp.allclose(y2, patch_embed_ref(x2, gamma2, beta2), atol=1e-5, rtol=1e-5)

    print("KERNEL_OK")
</pallas_src>

<mosaic_0001>
module attributes {stable_mosaic.version = 11 : i64} {
  func.func @_patch_embed_kernel(%arg0: i32, %arg1: i32, %arg2: memref<2x128x256xf32, #tpu.memory_space<vmem>>, %arg3: memref<2x256x128xf32, #tpu.memory_space<vmem>>) attributes {dimension_semantics = [#tpu.dimension_semantics<parallel>, #tpu.dimension_semantics<parallel>], iteration_bounds = array<i64: 1, 1>, scalar_prefetch = 0 : i64, scratch_operands = 0 : i64, tpu.core_type = #tpu.core_type<tc>, window_params = [{transform_indices = @transform_0, window_bounds = array<i64: 2, 128, 256>}, {transform_indices = @transform_1, window_bounds = array<i64: 2, 256, 128>}]} {
    %c0 = arith.constant 0 : index
    %c0_0 = arith.constant 0 : index
    %c0_1 = arith.constant 0 : index
    %0 = vector.load %arg2[%c0, %c0_0, %c0_1] : memref<2x128x256xf32, #tpu.memory_space<vmem>>, vector<1x128x256xf32>
    %1 = vector.shape_cast %0 : vector<1x128x256xf32> to vector<128x256xf32>
    %2 = tpu.transpose %1, [1, 0] : vector<128x256xf32> -> vector<256x128xf32>
    %c0_2 = arith.constant 0 : index
    %c0_3 = arith.constant 0 : index
    %c0_4 = arith.constant 0 : index
    %3 = vector.load %arg3[%c0_2, %c0_3, %c0_4] : memref<2x256x128xf32, #tpu.memory_space<vmem>>, vector<1x256x128xf32>
    %4 = vector.shape_cast %3 : vector<1x256x128xf32> to vector<256x128xf32>
    %5 = vector.shape_cast %2 : vector<256x128xf32> to vector<1x256x128xf32>
    tpu.vector_store %arg3[%c0_2, %c0_3, %c0_4], %5 {strides = array<i32>} : memref<2x256x128xf32, #tpu.memory_space<vmem>>, vector<1x256x128xf32>,
    %c1 = arith.constant 1 : index
    %c0_5 = arith.constant 0 : index
    %c0_6 = arith.constant 0 : index
    %6 = vector.load %arg2[%c1, %c0_5, %c0_6] : memref<2x128x256xf32, #tpu.memory_space<vmem>>, vector<1x128x256xf32>
    %7 = vector.shape_cast %6 : vector<1x128x256xf32> to vector<128x256xf32>
    %8 = tpu.transpose %7, [1, 0] : vector<128x256xf32> -> vector<256x128xf32>
    %c1_7 = arith.constant 1 : index
    %c0_8 = arith.constant 0 : index
    %c0_9 = arith.constant 0 : index
    %9 = vector.load %arg3[%c1_7, %c0_8, %c0_9] : memref<2x256x128xf32, #tpu.memory_space<vmem>>, vector<1x256x128xf32>
    %10 = vector.shape_cast %9 : vector<1x256x128xf32> to vector<256x128xf32>
    %11 = vector.shape_cast %8 : vector<256x128xf32> to vector<1x256x128xf32>
    tpu.vector_store %arg3[%c1_7, %c0_8, %c0_9], %11 {strides = array<i32>} : memref<2x256x128xf32, #tpu.memory_space<vmem>>, vector<1x256x128xf32>,
    return
  }
  func.func @transform_0(%arg0: i32, %arg1: i32) -> (i32, i32, i32) {
    %c0_i32 = arith.constant 0 : i32
    %c0_i32_0 = arith.constant 0 : i32
    return %arg0, %c0_i32, %arg1 : i32, i32, i32
  }
  func.func @transform_1(%arg0: i32, %arg1: i32) -> (i32, i32, i32) {
    %c0_i32 = arith.constant 0 : i32
    %c0_i32_0 = arith.constant 0 : i32
    return %arg0, %arg1, %c0_i32 : i32, i32, i32
  }
}

</mosaic_0001>

<bundles_post_ra>
// kernel: tpu_custom_call.1
= control target key start
LH: loop header
LB: loop body
LE: loop exit
PB: predicated region body
PF: predicated region fallthrough
CT: control target
= control target key end

     0   :  { %6 = vsyncpa [#allocation3], 0  ;;  %s382_s0 = inlined_call_operand.hbm [shape: f32[2,128,256], index: 0, kind: input, shape index: {}]   ;;  %s383_s1 = inlined_call_operand.hbm [shape: f32[2,256,128], index: 1, kind: output, shape index: {}]  }
   0x1   :  { %7 = vsyncpa [#allocation4], 0  ;;  %s12_s8 = sshll.u32 %s382_s0, 4  ;;  %s360_s9 = smov [#allocation2]   ;;  %s13_s8 = int_to_ptr.hbm [resolvable:$true] %s12_s8 }
   0x2   :  { %s14_s10 = sshll.u32 %s360_s9, 4  ;;  %s361_s11 = smov 256   ;;  %s15_s10 = int_to_ptr.vmem [resolvable:$true] %s14_s10 }
   0x3   :  { %s362_s12 = smov 16  }
   0x4   :  { %20 = dma.hbm_to_vmem [thread:$0]  %s13_s8, 8192, %s15_s10, [#allocation3], %s361_s11, %s361_s11, %s362_s12  }
   0x5   :  { %356 = dma.done.wait [#allocation3], 8192  }
   0x6   :  { %357 = vsyncadd [#allocation3], 4294959104  ;;  %v25_v0 = vld [vmem:[#allocation2] sm:$0xff]  ;;  %v27_v1 = vld [vmem:[#allocation2 + $0x10] sm:$0xff]  ;;  %s363_s0 = smov [#allocation5]   ;;  %s289_s16 = sshll.u32 %s383_s1, 4  ;;  %s290_s16 = int_to_ptr.hbm [resolvable:$true] %s289_s16 }
   0x7   :  { %57 = vxpose.xlu0.b32.start [1/16] %v25_v0, 128  ;;  %v29_v2 = vld [vmem:[#allocation2 + $0x20] sm:$0xff]  ;;  %v31_v3 = vld [vmem:[#allocation2 + $0x30] sm:$0xff]  ;;  %v26_v12 = vld [vmem:[#allocation2 + $0x8] sm:$0xff]  ;;  %s287_s13 = sshll.u32 %s363_s0, 4  ;;  %s364_s17 = smov 128   ;;  %s288_s13 = int_to_ptr.vmem [resolvable:$true] %s287_s13 }
   0x8   :  { %v33_v4 = vld [vmem:[#allocation2 + $0x40] sm:$0xff]  ;;  %v35_v5 = vld [vmem:[#allocation2 + $0x50] sm:$0xff]  ;;  %89 = vxpose.xlu1.b32.start [1/16] %v26_v12, 128  ;;  %v28_v14 = vld [vmem:[#allocation2 + $0x18] sm:$0xff]  ;;  %s365_s18 = smov 8  }
   0x9   :  { %v37_v6 = vld [vmem:[#allocation2 + $0x60] sm:$0xff]  ;;  %v39_v7 = vld [vmem:[#allocation2 + $0x70] sm:$0xff]  ;;  %v30_v17 = vld [vmem:[#allocation2 + $0x28] sm:$0xff] }
   0xa   :  { %v41_v8 = vld [vmem:[#allocation2 + $0x80] sm:$0xff]  ;;  %v43_v9 = vld [vmem:[#allocation2 + $0x90] sm:$0xff]  ;;  %v32_v20 = vld [vmem:[#allocation2 + $0x38] sm:$0xff] }
   0xb   :  { %v45_v10 = vld [vmem:[#allocation2 + $0xa0] sm:$0xff]  ;;  %v47_v11 = vld [vmem:[#allocation2 + $0xb0] sm:$0xff]  ;;  %v34_v23 = vld [vmem:[#allocation2 + $0x48] sm:$0xff] }
   0xc   :  { %v49_v13 = vld [vmem:[#allocation2 + $0xc0] sm:$0xff]  ;;  %v51_v15 = vld [vmem:[#allocation2 + $0xd0] sm:$0xff]  ;;  %v155_v24 = vld [vmem:[#allocation2 + $0x108] sm:$0xff] }
   0xd   :  { %v154_v16 = vld [vmem:[#allocation2 + $0x100] sm:$0xff]  ;;  %v156_v19 = vld [vmem:[#allocation2 + $0x110] sm:$0xff]  ;;  %v157_v26 = vld [vmem:[#allocation2 + $0x118] sm:$0xff] }
   0xe   :  { %186 = vxpose.xlu2.b32.start [1/16] %v154_v16, 128  ;;  %v53_v18 = vld [vmem:[#allocation2 + $0xe0] sm:$0xff]  ;;  %v55_v21 = vld [vmem:[#allocation2 + $0xf0] sm:$0xff]  ;;  %v36_v27 = vld [vmem:[#allocation2 + $0x58] sm:$0xff] }
   0xf   :  { %58 = vxpose.xlu0.b32.cont [2/16] %v27_v1, 128  ;;  %v158_v22 = vld [vmem:[#allocation2 + $0x120] sm:$0xff]  ;;  %v160_v25 = vld [vmem:[#allocation2 + $0x130] sm:$0xff]  ;;  %v159_v29 = vld [vmem:[#allocation2 + $0x128] sm:$0xff] }
  0x10   :  { %90 = vxpose.xlu1.b32.cont [2/16] %v28_v14, 128  ;;  %v162_v28 = vld [vmem:[#allocation2 + $0x140] sm:$0xff]  ;;  %v38_v30 = vld [vmem:[#allocation2 + $0x68] sm:$0xff]  ;;  %v164_v31 = vld [vmem:[#allocation2 + $0x150] sm:$0xff] }
  0x11   :  { %v161_v32 = vld [vmem:[#allocation2 + $0x138] sm:$0xff]  ;;  %v166_v34 = vld [vmem:[#allocation2 + $0x160] sm:$0xff]  ;;  %v163_v35 = vld [vmem:[#allocation2 + $0x148] sm:$0xff] }
  0x12   :  { %v40_v33 = vld [vmem:[#allocation2 + $0x78] sm:$0xff]  ;;  %v42_v36 = vld [vmem:[#allocation2 + $0x88] sm:$0xff]  ;;  %v168_v37 = vld [vmem:[#allocation2 + $0x170] sm:$0xff] }
  0x13   :  { %v165_v39 = vld [vmem:[#allocation2 + $0x158] sm:$0xff]  ;;  %v170_v41 = vld [vmem:[#allocation2 + $0x180] sm:$0xff]  ;;  %v167_v43 = vld [vmem:[#allocation2 + $0x168] sm:$0xff] }
  0x14   :  { %v44_v40 = vld [vmem:[#allocation2 + $0x98] sm:$0xff]  ;;  %v46_v44 = vld [vmem:[#allocation2 + $0xa8] sm:$0xff]  ;;  %v172_v45 = vld [vmem:[#allocation2 + $0x190] sm:$0xff] }
  0x15   :  { %v169_v47 = vld [vmem:[#allocation2 + $0x178] sm:$0xff]  ;;  %v174_v49 = vld [vmem:[#allocation2 + $0x1a0] sm:$0xff]  ;;  %v171_v51 = vld [vmem:[#allocation2 + $0x188] sm:$0xff] }
  0x16   :  { %187 = vxpose.xlu2.b32.cont [2/16] %v156_v19, 128  ;;  %v48_v48 = vld [vmem:[#allocation2 + $0xb8] sm:$0xff]  ;;  %v50_v52 = vld [vmem:[#allocation2 + $0xc8] sm:$0xff]  ;;  %v176_v53 = vld [vmem:[#allocation2 + $0x1b0] sm:$0xff] }
  0x17   :  { %59 = vxpose.xlu0.b32.cont [3/16] %v29_v2, 128  ;;  %v173_v55 = vld [vmem:[#allocation2 + $0x198] sm:$0xff]  ;;  %v178_v57 = vld [vmem:[#allocation2 + $0x1c0] sm:$0xff]  ;;  %v175_v59 = vld [vmem:[#allocation2 + $0x1a8] sm:$0xff] }
  0x18   :  { %91 = vxpose.xlu1.b32.cont [3/16] %v30_v17, 128  ;;  %v52_v56 = vld [vmem:[#allocation2 + $0xd8] sm:$0xff]  ;;  %v54_v60 = vld [vmem:[#allocation2 + $0xe8] sm:$0xff]  ;;  %v180_v61 = vld [vmem:[#allocation2 + $0x1d0] sm:$0xff] }
  0x19   :  { %v177_v63 = vld [vmem:[#allocation2 + $0x1b8] sm:$0xff]  ;;  %v182_v1 = vld [vmem:[#allocation2 + $0x1e0] sm:$0xff] }
  0x1a   :  { %v56_v0 = vld [vmem:[#allocation2 + $0xf8] sm:$0xff] }
  0x1e   :  { %188 = vxpose.xlu2.b32.cont [3/16] %v158_v22, 128 }
  0x1f   :  { %60 = vxpose.xlu0.b32.cont [4/16] %v31_v3, 128  ;;  %v179_v3 = vld [vmem:[#allocation2 + $0x1c8] sm:$0xff] }
  0x20   :  { %92 = vxpose.xlu1.b32.cont [4/16] %v32_v20, 128 }
  0x26   :  { %189 = vxpose.xlu2.b32.cont [4/16] %v160_v25, 128 }
  0x27   :  { %61 = vxpose.xlu0.b32.cont [5/16] %v33_v4, 128  ;;  %v184_v4 = vld [vmem:[#allocation2 + $0x1f0] sm:$0xff] }
  0x28   :  { %93 = vxpose.xlu1.b32.cont [5/16] %v34_v23, 128 }
  0x2e   :  { %190 = vxpose.xlu2.b32.cont [5/16] %v162_v28, 128 }
  0x2f   :  { %62 = vxpose.xlu0.b32.cont [6/16] %v35_v5, 128 }
  0x30   :  { %94 = vxpose.xlu1.b32.cont [6/16] %v36_v27, 128 }
  0x36   :  { %191 = vxpose.xlu2.b32.cont [6/16] %v164_v31, 128 }
  0x37   :  { %63 = vxpose.xlu0.b32.cont [7/16] %v37_v6, 128  ;;  %v181_v6 = vld [vmem:[#allocation2 + $0x1d8] sm:$0xff] }
  0x38   :  { %95 = vxpose.xlu1.b32.cont [7/16] %v38_v30, 128 }
  0x3e   :  { %192 = vxpose.xlu2.b32.cont [7/16] %v166_v34, 128 }
  0x3f   :  { %64 = vxpose.xlu0.b32.cont [8/16] %v39_v7, 128 }
  0x40   :  { %96 = vxpose.xlu1.b32.cont [8/16] %v40_v33, 128 }
  0x46   :  { %193 = vxpose.xlu2.b32.cont [8/16] %v168_v37, 128 }
  0x47   :  { %65 = vxpose.xlu0.b32.cont [9/16] %v41_v8, 128  ;;  %v183_v8 = vld [vmem:[#allocation2 + $0x1e8] sm:$0xff] }
  0x48   :  { %97 = vxpose.xlu1.b32.cont [9/16] %v42_v36, 128 }
  0x4e   :  { %194 = vxpose.xlu2.b32.cont [9/16] %v170_v41, 128 }
  0x4f   :  { %66 = vxpose.xlu0.b32.cont [10/16] %v43_v9, 128 }
  0x50   :  { %98 = vxpose.xlu1.b32.cont [10/16] %v44_v40, 128 }
  0x56   :  { %195 = vxpose.xlu2.b32.cont [10/16] %v172_v45, 128 }
  0x57   :  { %67 = vxpose.xlu0.b32.cont [11/16] %v45_v10, 128  ;;  %v185_v10 = vld [vmem:[#allocation2 + $0x1f8] sm:$0xff] }
  0x58   :  { %99 = vxpose.xlu1.b32.cont [11/16] %v46_v44, 128 }
  0x5e   :  { %196 = vxpose.xlu2.b32.cont [11/16] %v174_v49, 128 }
  0x5f   :  { %68 = vxpose.xlu0.b32.cont [12/16] %v47_v11, 128 }
  0x60   :  { %100 = vxpose.xlu1.b32.cont [12/16] %v48_v48, 128 }
  0x66   :  { %197 = vxpose.xlu2.b32.cont [12/16] %v176_v53, 128 }
  0x67   :  { %69 = vxpose.xlu0.b32.cont [13/16] %v49_v13, 128 }
  0x68   :  { %101 = vxpose.xlu1.b32.cont [13/16] %v50_v52, 128 }
  0x6e   :  { %198 = vxpose.xlu2.b32.cont [13/16] %v178_v57, 128 }
  0x6f   :  { %70 = vxpose.xlu0.b32.cont [14/16] %v51_v15, 128 }
  0x70   :  { %102 = vxpose.xlu1.b32.cont [14/16] %v52_v56, 128 }
  0x76   :  { %199 = vxpose.xlu2.b32.cont [14/16] %v180_v61, 128 }
  0x77   :  { %71 = vxpose.xlu0.b32.cont [15/16] %v53_v18, 128 }
  0x78   :  { %103 = vxpose.xlu1.b32.cont [15/16] %v54_v60, 128 }
  0x7e   :  { %200 = vxpose.xlu2.b32.cont [15/16] %v182_v1, 128 }
  0x7f   :  { %72 = vxpose.xlu0.b32.end [16/16] %v55_v21, 128 }
  0x80   :  { %104 = vxpose.xlu1.b32.end [16/16] %v56_v0, 128 }
  0x86   :  { %201 = vxpose.xlu2.b32.end [16/16] %v184_v4, 128 }
  0x87   :  { %218 = vxpose.xlu0.b32.start [1/16] %v155_v24, 128 }
  0x8f   :  { %219 = vxpose.xlu0.b32.cont [2/16] %v157_v26, 128 }
  0x97   :  { %220 = vxpose.xlu0.b32.cont [3/16] %v159_v29, 128 }
  0x9f   :  { %221 = vxpose.xlu0.b32.cont [4/16] %v161_v32, 128 }
  0xa7   :  { %222 = vxpose.xlu0.b32.cont [5/16] %v163_v35, 128  ;;  %v202_v12 = vpop.trf.xlu2 }
  0xa8   :  { %251 = vst [vmem:[#allocation5 + $0x100] sm:$0xff] %v202_v12 }
  0xab   :  { %v73_v38 = vpop.trf.xlu0 }
  0xac   :  { %121 = vst [vmem:[#allocation5] sm:$0xff] %v73_v38  ;;  %v105_v13 = vpop.trf.xlu1 }
  0xad   :  { %137 = vst [vmem:[#allocation5 + $0x80] sm:$0xff] %v105_v13 }
  0xaf   :  { %223 = vxpose.xlu0.b32.cont [6/16] %v165_v39, 128  ;;  %v203_v15 = vpop.trf.xlu2 }
  0xb0   :  { %252 = vst [vmem:[#allocation5 + $0x108] sm:$0xff] %v203_v15 }
  0xb3   :  { %v74_v42 = vpop.trf.xlu0 }
  0xb4   :  { %122 = vst [vmem:[#allocation5 + $0x8] sm:$0xff] %v74_v42  ;;  %v106_v16 = vpop.trf.xlu1 }
  0xb5   :  { %138 = vst [vmem:[#allocation5 + $0x88] sm:$0xff] %v106_v16 }
  0xb7   :  { %224 = vxpose.xlu0.b32.cont [7/16] %v167_v43, 128  ;;  %v204_v18 = vpop.trf.xlu2 }
  0xb8   :  { %253 = vst [vmem:[#allocation5 + $0x110] sm:$0xff] %v204_v18 }
  0xbb   :  { %v75_v46 = vpop.trf.xlu0 }
  0xbc   :  { %123 = vst [vmem:[#allocation5 + $0x10] sm:$0xff] %v75_v46  ;;  %v107_v19 = vpop.trf.xlu1 }
  0xbd   :  { %139 = vst [vmem:[#allocation5 + $0x90] sm:$0xff] %v107_v19 }
  0xbf   :  { %225 = vxpose.xlu0.b32.cont [8/16] %v169_v47, 128  ;;  %v205_v21 = vpop.trf.xlu2 }
  0xc0   :  { %254 = vst [vmem:[#allocation5 + $0x118] sm:$0xff] %v205_v21 }
  0xc3   :  { %v76_v50 = vpop.trf.xlu0 }
  0xc4   :  { %124 = vst [vmem:[#allocation5 + $0x18] sm:$0xff] %v76_v50  ;;  %v108_v22 = vpop.trf.xlu1 }
  0xc5   :  { %140 = vst [vmem:[#allocation5 + $0x98] sm:$0xff] %v108_v22 }
  0xc7   :  { %226 = vxpose.xlu0.b32.cont [9/16] %v171_v51, 128  ;;  %v206_v24 = vpop.trf.xlu2 }
  0xc8   :  { %255 = vst [vmem:[#allocation5 + $0x120] sm:$0xff] %v206_v24 }
  0xcb   :  { %v77_v54 = vpop.trf.xlu0 }
  0xcc   :  { %125 = vst [vmem:[#allocation5 + $0x20] sm:$0xff] %v77_v54  ;;  %v109_v25 = vpop.trf.xlu1 }
  0xcd   :  { %141 = vst [vmem:[#allocation5 + $0xa0] sm:$0xff] %v109_v25 }
  0xcf   :  { %227 = vxpose.xlu0.b32.cont [10/16] %v173_v55, 128  ;;  %v207_v27 = vpop.trf.xlu2 }
  0xd0   :  { %256 = vst [vmem:[#allocation5 + $0x128] sm:$0xff] %v207_v27 }
  0xd3   :  { %v78_v58 = vpop.trf.xlu0 }
  0xd4   :  { %126 = vst [vmem:[#allocation5 + $0x28] sm:$0xff] %v78_v58  ;;  %v110_v28 = vpop.trf.xlu1 }
  0xd5   :  { %142 = vst [vmem:[#allocation5 + $0xa8] sm:$0xff] %v110_v28 }
  0xd7   :  { %228 = vxpose.xlu0.b32.cont [11/16] %v175_v59, 128  ;;  %v208_v30 = vpop.trf.xlu2 }
  0xd8   :  { %257 = vst [vmem:[#allocation5 + $0x130] sm:$0xff] %v208_v30 }
  0xdb   :  { %v79_v62 = vpop.trf.xlu0 }
  0xdc   :  { %127 = vst [vmem:[#allocation5 + $0x30] sm:$0xff] %v79_v62  ;;  %v111_v31 = vpop.trf.xlu1 }
  0xdd   :  { %143 = vst [vmem:[#allocation5 + $0xb0] sm:$0xff] %v111_v31 }
  0xdf   :  { %229 = vxpose.xlu0.b32.cont [12/16] %v177_v63, 128  ;;  %v209_v33 = vpop.trf.xlu2 }
  0xe0   :  { %258 = vst [vmem:[#allocation5 + $0x138] sm:$0xff] %v209_v33 }
  0xe3   :  { %v80_v2 = vpop.trf.xlu0 }
  0xe4   :  { %128 = vst [vmem:[#allocation5 + $0x38] sm:$0xff] %v80_v2  ;;  %v112_v34 = vpop.trf.xlu1 }
  0xe5   :  { %144 = vst [vmem:[#allocation5 + $0xb8] sm:$0xff] %v112_v34 }
  0xe7   :  { %230 = vxpose.xlu0.b32.cont [13/16] %v179_v3, 128  ;;  %v210_v36 = vpop.trf.xlu2 }
  0xe8   :  { %259 = vst [vmem:[#allocation5 + $0x140] sm:$0xff] %v210_v36 }
  0xeb   :  { %v81_v5 = vpop.trf.xlu0 }
  0xec   :  { %129 = vst [vmem:[#allocation5 + $0x40] sm:$0xff] %v81_v5  ;;  %v113_v37 = vpop.trf.xlu1 }
  0xed   :  { %145 = vst [vmem:[#allocation5 + $0xc0] sm:$0xff] %v113_v37 }
  0xef   :  { %231 = vxpose.xlu0.b32.cont [14/16] %v181_v6, 128  ;;  %v211_v39 = vpop.trf.xlu2 }
  0xf0   :  { %260 = vst [vmem:[#allocation5 + $0x148] sm:$0xff] %v211_v39 }
  0xf3   :  { %v82_v7 = vpop.trf.xlu0 }
  0xf4   :  { %130 = vst [vmem:[#allocation5 + $0x48] sm:$0xff] %v82_v7  ;;  %v114_v40 = vpop.trf.xlu1 }
  0xf5   :  { %146 = vst [vmem:[#allocation5 + $0xc8] sm:$0xff] %v114_v40 }
  0xf7   :  { %232 = vxpose.xlu0.b32.cont [15/16] %v183_v8, 128  ;;  %v212_v42 = vpop.trf.xlu2 }
  0xf8   :  { %261 = vst [vmem:[#allocation5 + $0x150] sm:$0xff] %v212_v42 }
  0xfb   :  { %v83_v9 = vpop.trf.xlu0 }
  0xfc   :  { %131 = vst [vmem:[#allocation5 + $0x50] sm:$0xff] %v83_v9  ;;  %v115_v43 = vpop.trf.xlu1 }
  0xfd   :  { %147 = vst [vmem:[#allocation5 + $0xd0] sm:$0xff] %v115_v43 }
  0xff   :  { %233 = vxpose.xlu0.b32.end [16/16] %v185_v10, 128  ;;  %v213_v45 = vpop.trf.xlu2 }
 0x100   :  { %262 = vst [vmem:[#allocation5 + $0x158] sm:$0xff] %v213_v45 }
 0x103   :  { %v84_v11 = vpop.trf.xlu0 }
 0x104   :  { %132 = vst [vmem:[#allocation5 + $0x58] sm:$0xff] %v84_v11  ;;  %v116_v46 = vpop.trf.xlu1 }
 0x105   :  { %148 = vst [vmem:[#allocation5 + $0xd8] sm:$0xff] %v116_v46 }
 0x107   :  { %v214_v48 = vpop.trf.xlu2 }
 0x108   :  { %263 = vst [vmem:[#allocation5 + $0x160] sm:$0xff] %v214_v48 }
 0x10b   :  { %v85_v14 = vpop.trf.xlu0 }
 0x10c   :  { %133 = vst [vmem:[#allocation5 + $0x60] sm:$0xff] %v85_v14  ;;  %v117_v49 = vpop.trf.xlu1 }
 0x10d   :  { %149 = vst [vmem:[#allocation5 + $0xe0] sm:$0xff] %v117_v49 }
 0x10f   :  { %v215_v51 = vpop.trf.xlu2 }
 0x110   :  { %264 = vst [vmem:[#allocation5 + $0x168] sm:$0xff] %v215_v51 }
 0x113   :  { %v86_v17 = vpop.trf.xlu0 }
 0x114   :  { %134 = vst [vmem:[#allocation5 + $0x68] sm:$0xff] %v86_v17  ;;  %v118_v52 = vpop.trf.xlu1 }
 0x115   :  { %150 = vst [vmem:[#allocation5 + $0xe8] sm:$0xff] %v118_v52 }
 0x117   :  { %v216_v54 = vpop.trf.xlu2 }
 0x118   :  { %265 = vst [vmem:[#allocation5 + $0x170] sm:$0xff] %v216_v54 }
 0x11b   :  { %v87_v20 = vpop.trf.xlu0 }
 0x11c   :  { %135 = vst [vmem:[#allocation5 + $0x70] sm:$0xff] %v87_v20  ;;  %v119_v55 = vpop.trf.xlu1 }
 0x11d   :  { %151 = vst [vmem:[#allocation5 + $0xf0] sm:$0xff] %v119_v55 }
 0x11f   :  { %v217_v57 = vpop.trf.xlu2 }
 0x120   :  { %266 = vst [vmem:[#allocation5 + $0x178] sm:$0xff] %v217_v57 }
 0x123   :  { %v88_v23 = vpop.trf.xlu0 }
 0x124   :  { %136 = vst [vmem:[#allocation5 + $0x78] sm:$0xff] %v88_v23  ;;  %v120_v58 = vpop.trf.xlu1 }
 0x125   :  { %152 = vst [vmem:[#allocation5 + $0xf8] sm:$0xff] %v120_v58 }
 0x12b   :  { %v234_v26 = vpop.trf.xlu0 }
 0x12c   :  { %267 = vst [vmem:[#allocation5 + $0x180] sm:$0xff] %v234_v26 }
 0x133   :  { %v235_v29 = vpop.trf.xlu0 }
 0x134   :  { %268 = vst [vmem:[#allocation5 + $0x188] sm:$0xff] %v235_v29 }
 0x13b   :  { %v236_v32 = vpop.trf.xlu0 }
 0x13c   :  { %269 = vst [vmem:[#allocation5 + $0x190] sm:$0xff] %v236_v32 }
 0x143   :  { %v237_v35 = vpop.trf.xlu0 }
 0x144   :  { %270 = vst [vmem:[#allocation5 + $0x198] sm:$0xff] %v237_v35 }
 0x14b   :  { %v238_v38 = vpop.trf.xlu0 }
 0x14c   :  { %271 = vst [vmem:[#allocation5 + $0x1a0] sm:$0xff] %v238_v38 }
 0x153   :  { %v239_v41 = vpop.trf.xlu0 }
 0x154   :  { %272 = vst [vmem:[#allocation5 + $0x1a8] sm:$0xff] %v239_v41 }
 0x15b   :  { %v240_v44 = vpop.trf.xlu0 }
 0x15c   :  { %273 = vst [vmem:[#allocation5 + $0x1b0] sm:$0xff] %v240_v44 }
 0x163   :  { %v241_v47 = vpop.trf.xlu0 }
 0x164   :  { %274 = vst [vmem:[#allocation5 + $0x1b8] sm:$0xff] %v241_v47 }
 0x16b   :  { %v242_v50 = vpop.trf.xlu0 }
 0x16c   :  { %275 = vst [vmem:[#allocation5 + $0x1c0] sm:$0xff] %v242_v50 }
 0x173   :  { %v243_v53 = vpop.trf.xlu0 }
 0x174   :  { %276 = vst [vmem:[#allocation5 + $0x1c8] sm:$0xff] %v243_v53 }
 0x17b   :  { %v244_v56 = vpop.trf.xlu0 }
 0x17c   :  { %277 = vst [vmem:[#allocation5 + $0x1d0] sm:$0xff] %v244_v56 }
 0x183   :  { %v245_v59 = vpop.trf.xlu0 }
 0x184   :  { %278 = vst [vmem:[#allocation5 + $0x1d8] sm:$0xff] %v245_v59 }
 0x18b   :  { %v246_v60 = vpop.trf.xlu0 }
 0x18c   :  { %279 = vst [vmem:[#allocation5 + $0x1e0] sm:$0xff] %v246_v60 }
 0x193   :  { %v247_v61 = vpop.trf.xlu0 }
 0x194   :  { %280 = vst [vmem:[#allocation5 + $0x1e8] sm:$0xff] %v247_v61 }
 0x19b   :  { %v248_v62 = vpop.trf.xlu0 }
 0x19c   :  { %281 = vst [vmem:[#allocation5 + $0x1f0] sm:$0xff] %v248_v62 }
 0x1a3   :  { %v249_v63 = vpop.trf.xlu0 }
 0x1a4   :  { %282 = vst [vmem:[#allocation5 + $0x1f8] sm:$0xff] %v249_v63 }
 0x1a5   :  { %295 = dma.vmem_to_hbm [thread:$0]  %s288_s13, 8192, %s290_s16, [#allocation4], %s364_s17, %s364_s17, %s365_s18  }
 0x1a6   :  { %358 = dma.done.wait [#allocation4], 8192  }
 0x1a7   :  { %359 = vsyncadd [#allocation4], 4294959104 }
 0x1a8   :  { %300 = vsyncpa [#allocation3], 1 }
 0x1a9   :  { %301 = vsyncpa [#allocation4], 1 }

</bundles_post_ra>
